<compile_context>
chip_gen: v6e
topology: v6e:2x2x1
jax: 0.10.0
libtpu: 0.0.40
codegen_flags: <defaults>
</compile_context>

<pallas_src>
import functools
import math

import jax
import jax.numpy as jnp
import numpy as np
from jax.experimental import pallas as pl
from jax.experimental.pallas import tpu as pltpu

# Contract the last axis of both operands (used for q_h @ k_h^T).
_DN_TRANS_B = (((1,), (1,)), ((), ()))


def _round_up(x, m):
  return (x + m - 1) // m * m


def _vmem_limit_bytes():
  """Generation-aware VMEM budget with headroom for Mosaic scratch."""
  cap = None
  try:
    cap = int(pltpu.get_tpu_info().vmem_capacity_bytes)
  except Exception:
    cap = None
  if not cap:
    cap = 64 * 1024 * 1024
  # 7/8 of physical VMEM, capped at 112 MiB (v5e/v6e); ~56 MiB on v7x.
  return int(min(cap * 7 // 8, 112 * 1024 * 1024))


def _const_spec(shape):
  """BlockSpec for a block whose index never changes: single-buffer it."""
  idx = lambda *_: (0,) * len(shape)
  try:
    return pl.BlockSpec(shape, idx, pipeline_mode=pl.Buffered(1))
  except Exception:  # older jax without pipeline_mode: fall back (VMEM only)
    return pl.BlockSpec(shape, idx)


def _pick_row_tile(n_rows, tm):
  """Largest tile <= tm that divides n_rows (multiple of 8), else pad path."""
  if n_rows <= tm:
    return n_rows, False          # single full-extent block, no (8,128) rule
  upper = max(8, (min(tm, n_rows) // 8) * 8)
  for d in range(upper, 7, -8):
    if n_rows % d == 0:
      return d, False
  return upper, True              # no clean divisor -> zero-pad the tail tile


def _layer_norm(x, gamma, beta, eps):
  mu = jnp.mean(x, axis=-1, keepdims=True)
  var = jnp.mean(jnp.square(x - mu), axis=-1, keepdims=True)
  return (x - mu) * jax.lax.rsqrt(var + jnp.float32(eps)) * gamma + beta


def _attention_kernel(x_ref, mask_ref, wq_ref, bq_ref, wk_ref, bk_ref,
                      wv_ref, bv_ref, wo_ref, bo_ref, g1_ref, b1_ref,
                      o_ref, *, num_heads, head_size, eps, approx_recip):
  # x_ref: (1, S, H) one batch element; weights pre-transposed to (in, out).
  x_in = x_ref[0]
  x32 = x_in.astype(jnp.float32)                  # residual path (S, H)
  md = wq_ref.dtype                               # matmul operand dtype
  xc = x_in.astype(md)

  def proj(w_ref, b_ref):
    return (jnp.dot(xc, w_ref[...], preferred_element_type=jnp.float32)
            + b_ref[...])

  # Full-width QKV projections (MXU efficient), then cast once for the
  # attention-core matmuls.
  q = proj(wq_ref, bq_ref).astype(md)             # (S, H)
  k = proj(wk_ref, bk_ref).astype(md)
  v = proj(wv_ref, bv_ref).astype(md)

  mask = mask_ref[0].astype(jnp.float32)          # (1, S) additive mask
  scale = jnp.float32(1.0 / math.sqrt(head_size))

  # Accumulate the attention output directly in the output-projection basis:
  #   ao = sum_h softmax(q_h k_h^T * scale + mask) v_h @ Wo_T[h*d:(h+1)*d, :]
  ao = jnp.zeros_like(x32)                        # (S, H) f32 accumulator
  for h in range(num_heads):
    lo = h * head_size
    hi = lo + head_size
    qh = q[:, lo:hi]                              # static lane slices
    kh = k[:, lo:hi]
    vh = v[:, lo:hi]
    s = jax.lax.dot_general(qh, kh, _DN_TRANS_B,
                            preferred_element_type=jnp.float32)
    s = s * scale + mask                          # broadcast over query rows
    s = s - jnp.max(s, axis=-1, keepdims=True)
    p = jnp.exp(s)                                # un-normalized probs (f32)
    denom = jnp.sum(p, axis=-1, keepdims=True)    # (S, 1)
    pv = jnp.dot(p.astype(md), vh, preferred_element_type=jnp.float32)
    ctx_h = pv * pl.reciprocal(denom, approx=approx_recip)   # deferred norm
    # Static sublane slice of the (in, out) output-projection weight.
    ao = ao + jnp.dot(ctx_h.astype(md), wo_ref[lo:hi, :],
                      preferred_element_type=jnp.float32)

  out = _layer_norm(ao + bo_ref[...] + x32, g1_ref[...], b1_ref[...], eps)
  o_ref[0] = out.astype(o_ref.dtype)


def _ffn_kernel(a_ref, wi_ref, bi_ref, wo_ref, bo_ref, g_ref, b_ref, o_ref,
                *, eps):
  # a_ref: (TM, H) tile of attention-output tokens; weights in (in, out).
  a_in = a_ref[...]
  a32 = a_in.astype(jnp.float32)
  md = wi_ref.dtype

  h = jnp.dot(a_in.astype(md), wi_ref[...],
              preferred_element_type=jnp.float32) + bi_ref[...]
  # exact (erf) gelu, matching HF activations.gelu / torch default
  h = 0.5 * h * (1.0 + jax.lax.erf(h * jnp.float32(1.0 / math.sqrt(2.0))))

  y = jnp.dot(h.astype(md), wo_ref[...], preferred_element_type=jnp.float32)
  y = y + bo_ref[...] + a32                       # bias + residual
  o_ref[...] = _layer_norm(y, g_ref[...], b_ref[...], eps).astype(o_ref.dtype)


def bert_layer(hidden_states, params, attention_mask=None, *, num_heads,
               eps=1e-12, tm=512, matmul_dtype=jnp.bfloat16):
  """BertLayer forward.

  hidden_states: [B, S, H]; attention_mask: optional additive per-key mask of
  shape [B, S] (or anything reshapeable to it, e.g. HF's [B,1,1,S]);
  0 = keep, -10000 = masked. Returns [B, S, H].
  tm: FFN token tile (chosen as a divisor of B*S when possible).
  matmul_dtype: bf16 for peak MXU rate (default), f32 for bit-accurate tests.
  """
  B, S, H = hidden_states.shape
  assert H % num_heads == 0
  head_size = H // num_heads
  inter = params["inter_w"].shape[0]
  out_dtype = hidden_states.dtype
  precise = jnp.dtype(matmul_dtype) == jnp.dtype(jnp.float32)

  if attention_mask is None:
    attention_mask = jnp.zeros((B, S), jnp.float32)
  # Additive per-key mask only (broadcast over query rows).
  mask3 = attention_mask.astype(jnp.float32).reshape(B, 1, S)

  # One-time transpose to (in, out) layout + dtype cast (amortized over the
  # whole batch; avoids any trans-B relayout risk inside the kernels).
  def w_t(name):
    return jnp.asarray(params[name]).T.astype(matmul_dtype)

  def vec(name):
    return jnp.asarray(params[name]).astype(jnp.float32).reshape(1, -1)

  cparams = pltpu.CompilerParams(
      dimension_semantics=("parallel",),
      vmem_limit_bytes=_vmem_limit_bytes())

  # ---------- kernel 1: QKV + per-head attention folded into the output
  # projection + bias/residual + LayerNorm, grid over batch.
  attn_kernel = functools.partial(
      _attention_kernel, num_heads=num_heads, head_size=head_size, eps=eps,
      approx_recip=not precise)

  attn_out = pl.pallas_call(
      attn_kernel,
      out_shape=jax.ShapeDtypeStruct((B, S, H), out_dtype),
      grid_spec=pltpu.PrefetchScalarGridSpec(
          num_scalar_prefetch=0,
          grid=(B,),
          in_specs=[
              pl.BlockSpec((1, S, H), lambda g: (g, 0, 0)),   # hidden states
              pl.BlockSpec((1, 1, S), lambda g: (g, 0, 0)),   # additive mask
              _const_spec((H, H)), _const_spec((1, H)),       # Wq^T, bq
              _const_spec((H, H)), _const_spec((1, H)),       # Wk^T, bk
              _const_spec((H, H)), _const_spec((1, H)),       # Wv^T, bv
              _const_spec((H, H)), _const_spec((1, H)),       # Wo^T, bo
              _const_spec((1, H)), _const_spec((1, H)),       # LN1 gamma, beta
          ],
          out_specs=pl.BlockSpec((1, S, H), lambda g: (g, 0, 0)),
      ),
      compiler_params=cparams,
  )(hidden_states, mask3,
    w_t("q_w"), vec("q_b"), w_t("k_w"), vec("k_b"), w_t("v_w"), vec("v_b"),
    w_t("attn_out_w"), vec("attn_out_b"), vec("ln1_g"), vec("ln1_b"))

  # ---------- kernel 2: feed-forward over token tiles (pad only if no clean
  # divisor of B*S exists).
  n_rows = B * S
  a_flat = attn_out.reshape(n_rows, H)
  tm_eff, needs_pad = _pick_row_tile(n_rows, tm)
  if needs_pad:
    padded = _round_up(n_rows, tm_eff)
    a_flat = jnp.pad(a_flat, ((0, padded - n_rows), (0, 0)))
  else:
    padded = n_rows

  ffn_kernel = functools.partial(_ffn_kernel, eps=eps)
  out_flat = pl.pallas_call(
      ffn_kernel,
      out_shape=jax.ShapeDtypeStruct((padded, H), out_dtype),
      grid_spec=pltpu.PrefetchScalarGridSpec(
          num_scalar_prefetch=0,
          grid=(padded // tm_eff,),
          in_specs=[
              pl.BlockSpec((tm_eff, H), lambda i: (i, 0)),    # attn output
              _const_spec((H, inter)),                        # Wi^T
              _const_spec((1, inter)),                        # bi
              _const_spec((inter, H)),                        # Wo2^T
              _const_spec((1, H)),                            # bo2
              _const_spec((1, H)),                            # LN2 gamma
              _const_spec((1, H)),                            # LN2 beta
          ],
          out_specs=pl.BlockSpec((tm_eff, H), lambda i: (i, 0)),
      ),
      compiler_params=cparams,
  )(a_flat, w_t("inter_w"), vec("inter_b"), w_t("out_w"), vec("out_b"),
    vec("ln2_g"), vec("ln2_b"))

  if needs_pad:
    out_flat = out_flat[:n_rows]
  return out_flat.reshape(B, S, H)


def _reference(x, params, mask, num_heads, eps=1e-12):
  B, S, H = x.shape
  hd = H // num_heads

  def lin(a, wn, bn):
    return a @ params[wn].T + params[bn]

  def ln(a, g, b):
    mu = jnp.mean(a, -1, keepdims=True)
    var = jnp.mean(jnp.square(a - mu), -1, keepdims=True)
    return (a - mu) * jax.lax.rsqrt(var + eps) * params[g] + params[b]

  def split(a):
    return a.reshape(B, S, num_heads, hd).transpose(0, 2, 1, 3)

  q = split(lin(x, "q_w", "q_b"))
  k = split(lin(x, "k_w", "k_b"))
  v = split(lin(x, "v_w", "v_b"))
  s = jnp.einsum("bnqd,bnkd->bnqk", q, k) / np.sqrt(hd)
  s = s + mask[:, None, None, :]
  s = s - s.max(-1, keepdims=True)
  p = jnp.exp(s)
  p = p / p.sum(-1, keepdims=True)
  ctx = jnp.einsum("bnqk,bnkd->bnqd", p, v).transpose(0, 2, 1, 3).reshape(B, S, H)
  attn = ln(lin(ctx, "attn_out_w", "attn_out_b") + x, "ln1_g", "ln1_b")
  h = lin(attn, "inter_w", "inter_b")
  h = 0.5 * h * (1.0 + jax.lax.erf(h / np.sqrt(2.0)))
  y = lin(h, "out_w", "out_b")
  return ln(y + attn, "ln2_g", "ln2_b")


if __name__ == "__main__":
  # Small config consistent with the module: hidden_act='gelu',
  # layer_norm_eps=1e-12, intermediate_size=4*hidden_size.
  B, S, H, NH = 2, 8, 32, 4
  INTER = 4 * H

  key = jax.random.PRNGKey(0)
  ks = jax.random.split(key, 18)
  init = lambda k, shape: 0.02 * jax.random.normal(k, shape, jnp.float32)

  params = {
      "q_w": init(ks[0], (H, H)), "q_b": init(ks[1], (H,)),
      "k_w": init(ks[2], (H, H)), "k_b": init(ks[3], (H,)),
      "v_w": init(ks[4], (H, H)), "v_b": init(ks[5], (H,)),
      "attn_out_w": init(ks[6], (H, H)), "attn_out_b": init(ks[7], (H,)),
      "ln1_g": jnp.ones((H,), jnp.float32)
               + 0.01 * jax.random.normal(ks[8], (H,), jnp.float32),
      "ln1_b": 0.01 * jax.random.normal(ks[9], (H,), jnp.float32),
      "inter_w": init(ks[10], (INTER, H)), "inter_b": init(ks[11], (INTER,)),
      "out_w": init(ks[12], (H, INTER)), "out_b": init(ks[13], (H,)),
      "ln2_g": jnp.ones((H,), jnp.float32)
               + 0.01 * jax.random.normal(ks[14], (H,), jnp.float32),
      "ln2_b": 0.01 * jax.random.normal(ks[15], (H,), jnp.float32),
  }

  x = jax.random.normal(ks[16], (B, S, H), jnp.float32)
  # additive attention mask: last two key positions of batch 1 are masked out
  attention_mask = jnp.zeros((B, S), jnp.float32).at[1, S - 2:].set(-10000.0)

  ref = _reference(x, params, attention_mask, NH)

  # Bit-accuracy check: f32 matmul path.
  out_f32 = bert_layer(x, params, attention_mask, num_heads=NH,
                       matmul_dtype=jnp.float32)
  out_f32 = jax.block_until_ready(out_f32)
  np.testing.assert_allclose(np.asarray(out_f32), np.asarray(ref),
                             rtol=1e-4, atol=1e-4)

  # Production path: bf16 matmul operands with f32 accumulation.
  out_bf16 = bert_layer(x, params, attention_mask, num_heads=NH)
  out_bf16 = jax.block_until_ready(out_bf16)
  np.testing.assert_allclose(np.asarray(out_bf16), np.asarray(ref),
                             rtol=2e-2, atol=2e-2)

  print("KERNEL_OK")
</pallas_src>

<mosaic_0001>
module attributes {stable_mosaic.version = 11 : i64} {
  func.func @_attention_kernel(%arg0: i32, %arg1: memref<1x8x32xf32, #tpu.memory_space<vmem>>, %arg2: memref<1x1x8xf32, #tpu.memory_space<vmem>>, %arg3: memref<32x32xf32, #tpu.memory_space<vmem>>, %arg4: memref<1x32xf32, #tpu.memory_space<vmem>>, %arg5: memref<32x32xf32, #tpu.memory_space<vmem>>, %arg6: memref<1x32xf32, #tpu.memory_space<vmem>>, %arg7: memref<32x32xf32, #tpu.memory_space<vmem>>, %arg8: memref<1x32xf32, #tpu.memory_space<vmem>>, %arg9: memref<32x32xf32, #tpu.memory_space<vmem>>, %arg10: memref<1x32xf32, #tpu.memory_space<vmem>>, %arg11: memref<1x32xf32, #tpu.memory_space<vmem>>, %arg12: memref<1x32xf32, #tpu.memory_space<vmem>>, %arg13: memref<1x8x32xf32, #tpu.memory_space<vmem>>) attributes {dimension_semantics = [#tpu.dimension_semantics<parallel>], iteration_bounds = array<i64: 2>, scalar_prefetch = 0 : i64, scratch_operands = 0 : i64, tpu.core_type = #tpu.core_type<tc>, window_params = [{transform_indices = @transform_0, window_bounds = array<i64: 1, 8, 32>}, {transform_indices = @transform_1, window_bounds = array<i64: 1, 1, 8>}, {pipeline_mode = #tpu.pipeline_mode<synchronous>, transform_indices = @transform_2, window_bounds = array<i64: 32, 32>}, {pipeline_mode = #tpu.pipeline_mode<synchronous>, transform_indices = @transform_3, window_bounds = array<i64: 1, 32>}, {pipeline_mode = #tpu.pipeline_mode<synchronous>, transform_indices = @transform_4, window_bounds = array<i64: 32, 32>}, {pipeline_mode = #tpu.pipeline_mode<synchronous>, transform_indices = @transform_5, window_bounds = array<i64: 1, 32>}, {pipeline_mode = #tpu.pipeline_mode<synchronous>, transform_indices = @transform_6, window_bounds = array<i64: 32, 32>}, {pipeline_mode = #tpu.pipeline_mode<synchronous>, transform_indices = @transform_7, window_bounds = array<i64: 1, 32>}, {pipeline_mode = #tpu.pipeline_mode<synchronous>, transform_indices = @transform_8, window_bounds = array<i64: 32, 32>}, {pipeline_mode = #tpu.pipeline_mode<synchronous>, transform_indices = @transform_9, window_bounds = array<i64: 1, 32>}, {pipeline_mode = #tpu.pipeline_mode<synchronous>, transform_indices = @transform_10, window_bounds = array<i64: 1, 32>}, {pipeline_mode = #tpu.pipeline_mode<synchronous>, transform_indices = @transform_11, window_bounds = array<i64: 1, 32>}, {transform_indices = @transform_12, window_bounds = array<i64: 1, 8, 32>}]} {
    %c0 = arith.constant 0 : index
    %c0_0 = arith.constant 0 : index
    %c0_1 = arith.constant 0 : index
    %0 = vector.load %arg1[%c0, %c0_0, %c0_1] : memref<1x8x32xf32, #tpu.memory_space<vmem>>, vector<1x8x32xf32>
    %1 = vector.shape_cast %0 : vector<1x8x32xf32> to vector<8x32xf32>
    %c0_2 = arith.constant 0 : index
    %c0_3 = arith.constant 0 : index
    %2 = vector.load %arg3[%c0_2, %c0_3] : memref<32x32xf32, #tpu.memory_space<vmem>>, vector<32x32xf32>
    %cst = arith.constant dense<0.000000e+00> : vector<8x32xf32>
    %3 = tpu.matmul %1, %2, %cst {dimension_numbers = #tpu.dot_dimension_numbers<[1], [0], [0], [1], [0, 0, 1, 1], [], []>} : vector<8x32xf32>, vector<32x32xf32>, vector<8x32xf32> -> vector<8x32xf32>
    %c0_4 = arith.constant 0 : index
    %c0_5 = arith.constant 0 : index
    %4 = vector.load %arg4[%c0_4, %c0_5] : memref<1x32xf32, #tpu.memory_space<vmem>>, vector<1x32xf32>
    %5 = vector.broadcast %4 : vector<1x32xf32> to vector<8x32xf32>
    %6 = arith.addf %3, %5 : vector<8x32xf32>
    %c0_6 = arith.constant 0 : index
    %c0_7 = arith.constant 0 : index
    %7 = vector.load %arg5[%c0_6, %c0_7] : memref<32x32xf32, #tpu.memory_space<vmem>>, vector<32x32xf32>
    %cst_8 = arith.constant dense<0.000000e+00> : vector<8x32xf32>
    %8 = tpu.matmul %1, %7, %cst_8 {dimension_numbers = #tpu.dot_dimension_numbers<[1], [0], [0], [1], [0, 0, 1, 1], [], []>} : vector<8x32xf32>, vector<32x32xf32>, vector<8x32xf32> -> vector<8x32xf32>
    %c0_9 = arith.constant 0 : index
    %c0_10 = arith.constant 0 : index
    %9 = vector.load %arg6[%c0_9, %c0_10] : memref<1x32xf32, #tpu.memory_space<vmem>>, vector<1x32xf32>
    %10 = vector.broadcast %9 : vector<1x32xf32> to vector<8x32xf32>
    %11 = arith.addf %8, %10 : vector<8x32xf32>
    %c0_11 = arith.constant 0 : index
    %c0_12 = arith.constant 0 : index
    %12 = vector.load %arg7[%c0_11, %c0_12] : memref<32x32xf32, #tpu.memory_space<vmem>>, vector<32x32xf32>
    %cst_13 = arith.constant dense<0.000000e+00> : vector<8x32xf32>
    %13 = tpu.matmul %1, %12, %cst_13 {dimension_numbers = #tpu.dot_dimension_numbers<[1], [0], [0], [1], [0, 0, 1, 1], [], []>} : vector<8x32xf32>, vector<32x32xf32>, vector<8x32xf32> -> vector<8x32xf32>
    %c0_14 = arith.constant 0 : index
    %c0_15 = arith.constant 0 : index
    %14 = vector.load %arg8[%c0_14, %c0_15] : memref<1x32xf32, #tpu.memory_space<vmem>>, vector<1x32xf32>
    %15 = vector.broadcast %14 : vector<1x32xf32> to vector<8x32xf32>
    %16 = arith.addf %13, %15 : vector<8x32xf32>
    %c0_16 = arith.constant 0 : index
    %c0_17 = arith.constant 0 : index
    %c0_18 = arith.constant 0 : index
    %17 = vector.load %arg2[%c0_16, %c0_17, %c0_18] : memref<1x1x8xf32, #tpu.memory_space<vmem>>, vector<1x1x8xf32>
    %18 = vector.shape_cast %17 : vector<1x1x8xf32> to vector<1x8xf32>
    %cst_19 = arith.constant 0.000000e+00 : f32
    %19 = vector.broadcast %cst_19 : f32 to vector<8x32xf32>
    %20 = vector.extract_strided_slice %6 {offsets = [0, 0], sizes = [8, 8], strides = [1, 1]} : vector<8x32xf32> to vector<8x8xf32>
    %21 = vector.extract_strided_slice %11 {offsets = [0, 0], sizes = [8, 8], strides = [1, 1]} : vector<8x32xf32> to vector<8x8xf32>
    %22 = vector.extract_strided_slice %16 {offsets = [0, 0], sizes = [8, 8], strides = [1, 1]} : vector<8x32xf32> to vector<8x8xf32>
    %cst_20 = arith.constant dense<0.000000e+00> : vector<8x8xf32>
    %23 = tpu.matmul %20, %21, %cst_20 {dimension_numbers = #tpu.dot_dimension_numbers<[1], [1], [0], [0], [0, 0, 1, 0], [], []>} : vector<8x8xf32>, vector<8x8xf32>, vector<8x8xf32> -> vector<8x8xf32>
    %cst_21 = arith.constant 0.353553385 : f32
    %24 = vector.broadcast %cst_21 : f32 to vector<8x8xf32>
    %25 = arith.mulf %23, %24 : vector<8x8xf32>
    %26 = vector.broadcast %18 : vector<1x8xf32> to vector<8x8xf32>
    %27 = arith.addf %25, %26 : vector<8x8xf32>
    %cst_22 = arith.constant dense<0xFF800000> : vector<8xf32>
    %28 = vector.multi_reduction <maximumf>, %27, %cst_22 [1] : vector<8x8xf32> to vector<8xf32>
    %29 = vector.shape_cast %28 : vector<8xf32> to vector<8x1xf32>
    %30 = vector.broadcast %29 : vector<8x1xf32> to vector<8x8xf32>
    %31 = arith.subf %27, %30 : vector<8x8xf32>
    %32 = math.exp %31 : vector<8x8xf32>
    %cst_23 = arith.constant dense<0.000000e+00> : vector<8xf32>
    %33 = vector.multi_reduction <add>, %32, %cst_23 [1] : vector<8x8xf32> to vector<8xf32>
    %34 = vector.shape_cast %33 : vector<8xf32> to vector<8x1xf32>
    %cst_24 = arith.constant dense<0.000000e+00> : vector<8x8xf32>
    %35 = tpu.matmul %32, %22, %cst_24 {dimension_numbers = #tpu.dot_dimension_numbers<[1], [0], [0], [1], [0, 0, 1, 1], [], []>} : vector<8x8xf32>, vector<8x8xf32>, vector<8x8xf32> -> vector<8x8xf32>
    %36 = tpu.reciprocal %34 : vector<8x1xf32> -> vector<8x1xf32>
    %37 = vector.broadcast %36 : vector<8x1xf32> to vector<8x8xf32>
    %38 = arith.mulf %35, %37 : vector<8x8xf32>
    %c0_25 = arith.constant 0 : index
    %c0_26 = arith.constant 0 : index
    %39 = vector.load %arg9[%c0_25, %c0_26] : memref<32x32xf32, #tpu.memory_space<vmem>>, vector<8x32xf32>
    %cst_27 = arith.constant dense<0.000000e+00> : vector<8x32xf32>
    %40 = tpu.matmul %38, %39, %cst_27 {dimension_numbers = #tpu.dot_dimension_numbers<[1], [0], [0], [1], [0, 0, 1, 1], [], []>} : vector<8x8xf32>, vector<8x32xf32>, vector<8x32xf32> -> vector<8x32xf32>
    %41 = arith.addf %19, %40 : vector<8x32xf32>
    %42 = vector.extract_strided_slice %6 {offsets = [0, 8], sizes = [8, 8], strides = [1, 1]} : vector<8x32xf32> to vector<8x8xf32>
    %43 = vector.extract_strided_slice %11 {offsets = [0, 8], sizes = [8, 8], strides = [1, 1]} : vector<8x32xf32> to vector<8x8xf32>
    %44 = vector.extract_strided_slice %16 {offsets = [0, 8], sizes = [8, 8], strides = [1, 1]} : vector<8x32xf32> to vector<8x8xf32>
    %cst_28 = arith.constant dense<0.000000e+00> : vector<8x8xf32>
    %45 = tpu.matmul %42, %43, %cst_28 {dimension_numbers = #tpu.dot_dimension_numbers<[1], [1], [0], [0], [0, 0, 1, 0], [], []>} : vector<8x8xf32>, vector<8x8xf32>, vector<8x8xf32> -> vector<8x8xf32>
    %cst_29 = arith.constant 0.353553385 : f32
    %46 = vector.broadcast %cst_29 : f32 to vector<8x8xf32>
    %47 = arith.mulf %45, %46 : vector<8x8xf32>
    %48 = vector.broadcast %18 : vector<1x8xf32> to vector<8x8xf32>
    %49 = arith.addf %47, %48 : vector<8x8xf32>
    %cst_30 = arith.constant dense<0xFF800000> : vector<8xf32>
    %50 = vector.multi_reduction <maximumf>, %49, %cst_30 [1] : vector<8x8xf32> to vector<8xf32>
    %51 = vector.shape_cast %50 : vector<8xf32> to vector<8x1xf32>
    %52 = vector.broadcast %51 : vector<8x1xf32> to vector<8x8xf32>
    %53 = arith.subf %49, %52 : vector<8x8xf32>
    %54 = math.exp %53 : vector<8x8xf32>
    %cst_31 = arith.constant dense<0.000000e+00> : vector<8xf32>
    %55 = vector.multi_reduction <add>, %54, %cst_31 [1] : vector<8x8xf32> to vector<8xf32>
    %56 = vector.shape_cast %55 : vector<8xf32> to vector<8x1xf32>
    %cst_32 = arith.constant dense<0.000000e+00> : vector<8x8xf32>
    %57 = tpu.matmul %54, %44, %cst_32 {dimension_numbers = #tpu.dot_dimension_numbers<[1], [0], [0], [1], [0, 0, 1, 1], [], []>} : vector<8x8xf32>, vector<8x8xf32>, vector<8x8xf32> -> vector<8x8xf32>
    %58 = tpu.reciprocal %56 : vector<8x1xf32> -> vector<8x1xf32>
    %59 = vector.broadcast %58 : vector<8x1xf32> to vector<8x8xf32>
    %60 = arith.mulf %57, %59 : vector<8x8xf32>
    %c8 = arith.constant 8 : index
    %c0_33 = arith.constant 0 : index
    %61 = vector.load %arg9[%c8, %c0_33] : memref<32x32xf32, #tpu.memory_space<vmem>>, vector<8x32xf32>
    %cst_34 = arith.constant dense<0.000000e+00> : vector<8x32xf32>
    %62 = tpu.matmul %60, %61, %cst_34 {dimension_numbers = #tpu.dot_dimension_numbers<[1], [0], [0], [1], [0, 0, 1, 1], [], []>} : vector<8x8xf32>, vector<8x32xf32>, vector<8x32xf32> -> vector<8x32xf32>
    %63 = arith.addf %41, %62 : vector<8x32xf32>
    %64 = vector.extract_strided_slice %6 {offsets = [0, 16], sizes = [8, 8], strides = [1, 1]} : vector<8x32xf32> to vector<8x8xf32>
    %65 = vector.extract_strided_slice %11 {offsets = [0, 16], sizes = [8, 8], strides = [1, 1]} : vector<8x32xf32> to vector<8x8xf32>
    %66 = vector.extract_strided_slice %16 {offsets = [0, 16], sizes = [8, 8], strides = [1, 1]} : vector<8x32xf32> to vector<8x8xf32>
    %cst_35 = arith.constant dense<0.000000e+00> : vector<8x8xf32>
    %67 = tpu.matmul %64, %65, %cst_35 {dimension_numbers = #tpu.dot_dimension_numbers<[1], [1], [0], [0], [0, 0, 1, 0], [], []>} : vector<8x8xf32>, vector<8x8xf32>, vector<8x8xf32> -> vector<8x8xf32>
    %cst_36 = arith.constant 0.353553385 : f32
    %68 = vector.broadcast %cst_36 : f32 to vector<8x8xf32>
    %69 = arith.mulf %67, %68 : vector<8x8xf32>
    %70 = vector.broadcast %18 : vector<1x8xf32> to vector<8x8xf32>
    %71 = arith.addf %69, %70 : vector<8x8xf32>
    %cst_37 = arith.constant dense<0xFF800000> : vector<8xf32>
    %72 = vector.multi_reduction <maximumf>, %71, %cst_37 [1] : vector<8x8xf32> to vector<8xf32>
    %73 = vector.shape_cast %72 : vector<8xf32> to vector<8x1xf32>
    %74 = vector.broadcast %73 : vector<8x1xf32> to vector<8x8xf32>
    %75 = arith.subf %71, %74 : vector<8x8xf32>
    %76 = math.exp %75 : vector<8x8xf32>
    %cst_38 = arith.constant dense<0.000000e+00> : vector<8xf32>
    %77 = vector.multi_reduction <add>, %76, %cst_38 [1] : vector<8x8xf32> to vector<8xf32>
    %78 = vector.shape_cast %77 : vector<8xf32> to vector<8x1xf32>
    %cst_39 = arith.constant dense<0.000000e+00> : vector<8x8xf32>
    %79 = tpu.matmul %76, %66, %cst_39 {dimension_numbers = #tpu.dot_dimension_numbers<[1], [0], [0], [1], [0, 0, 1, 1], [], []>} : vector<8x8xf32>, vector<8x8xf32>, vector<8x8xf32> -> vector<8x8xf32>
    %80 = tpu.reciprocal %78 : vector<8x1xf32> -> vector<8x1xf32>
    %81 = vector.broadcast %80 : vector<8x1xf32> to vector<8x8xf32>
    %82 = arith.mulf %79, %81 : vector<8x8xf32>
    %c16 = arith.constant 16 : index
    %c0_40 = arith.constant 0 : index
    %83 = vector.load %arg9[%c16, %c0_40] : memref<32x32xf32, #tpu.memory_space<vmem>>, vector<8x32xf32>
    %cst_41 = arith.constant dense<0.000000e+00> : vector<8x32xf32>
    %84 = tpu.matmul %82, %83, %cst_41 {dimension_numbers = #tpu.dot_dimension_numbers<[1], [0], [0], [1], [0, 0, 1, 1], [], []>} : vector<8x8xf32>, vector<8x32xf32>, vector<8x32xf32> -> vector<8x32xf32>
    %85 = arith.addf %63, %84 : vector<8x32xf32>
    %86 = vector.extract_strided_slice %6 {offsets = [0, 24], sizes = [8, 8], strides = [1, 1]} : vector<8x32xf32> to vector<8x8xf32>
    %87 = vector.extract_strided_slice %11 {offsets = [0, 24], sizes = [8, 8], strides = [1, 1]} : vector<8x32xf32> to vector<8x8xf32>
    %88 = vector.extract_strided_slice %16 {offsets = [0, 24], sizes = [8, 8], strides = [1, 1]} : vector<8x32xf32> to vector<8x8xf32>
    %cst_42 = arith.constant dense<0.000000e+00> : vector<8x8xf32>
    %89 = tpu.matmul %86, %87, %cst_42 {dimension_numbers = #tpu.dot_dimension_numbers<[1], [1], [0], [0], [0, 0, 1, 0], [], []>} : vector<8x8xf32>, vector<8x8xf32>, vector<8x8xf32> -> vector<8x8xf32>
    %cst_43 = arith.constant 0.353553385 : f32
    %90 = vector.broadcast %cst_43 : f32 to vector<8x8xf32>
    %91 = arith.mulf %89, %90 : vector<8x8xf32>
    %92 = vector.broadcast %18 : vector<1x8xf32> to vector<8x8xf32>
    %93 = arith.addf %91, %92 : vector<8x8xf32>
    %cst_44 = arith.constant dense<0xFF800000> : vector<8xf32>
    %94 = vector.multi_reduction <maximumf>, %93, %cst_44 [1] : vector<8x8xf32> to vector<8xf32>
    %95 = vector.shape_cast %94 : vector<8xf32> to vector<8x1xf32>
    %96 = vector.broadcast %95 : vector<8x1xf32> to vector<8x8xf32>
    %97 = arith.subf %93, %96 : vector<8x8xf32>
    %98 = math.exp %97 : vector<8x8xf32>
    %cst_45 = arith.constant dense<0.000000e+00> : vector<8xf32>
    %99 = vector.multi_reduction <add>, %98, %cst_45 [1] : vector<8x8xf32> to vector<8xf32>
    %100 = vector.shape_cast %99 : vector<8xf32> to vector<8x1xf32>
    %cst_46 = arith.constant dense<0.000000e+00> : vector<8x8xf32>
    %101 = tpu.matmul %98, %88, %cst_46 {dimension_numbers = #tpu.dot_dimension_numbers<[1], [0], [0], [1], [0, 0, 1, 1], [], []>} : vector<8x8xf32>, vector<8x8xf32>, vector<8x8xf32> -> vector<8x8xf32>
    %102 = tpu.reciprocal %100 : vector<8x1xf32> -> vector<8x1xf32>
    %103 = vector.broadcast %102 : vector<8x1xf32> to vector<8x8xf32>
    %104 = arith.mulf %101, %103 : vector<8x8xf32>
    %c24 = arith.constant 24 : index
    %c0_47 = arith.constant 0 : index
    %105 = vector.load %arg9[%c24, %c0_47] : memref<32x32xf32, #tpu.memory_space<vmem>>, vector<8x32xf32>
    %cst_48 = arith.constant dense<0.000000e+00> : vector<8x32xf32>
    %106 = tpu.matmul %104, %105, %cst_48 {dimension_numbers = #tpu.dot_dimension_numbers<[1], [0], [0], [1], [0, 0, 1, 1], [], []>} : vector<8x8xf32>, vector<8x32xf32>, vector<8x32xf32> -> vector<8x32xf32>
    %107 = arith.addf %85, %106 : vector<8x32xf32>
    %c0_49 = arith.constant 0 : index
    %c0_50 = arith.constant 0 : index
    %108 = vector.load %arg10[%c0_49, %c0_50] : memref<1x32xf32, #tpu.memory_space<vmem>>, vector<1x32xf32>
    %109 = vector.broadcast %108 : vector<1x32xf32> to vector<8x32xf32>
    %110 = arith.addf %107, %109 : vector<8x32xf32>
    %111 = arith.addf %110, %1 : vector<8x32xf32>
    %c0_51 = arith.constant 0 : index
    %c0_52 = arith.constant 0 : index
    %112 = vector.load %arg11[%c0_51, %c0_52] : memref<1x32xf32, #tpu.memory_space<vmem>>, vector<1x32xf32>
    %c0_53 = arith.constant 0 : index
    %c0_54 = arith.constant 0 : index
    %113 = vector.load %arg12[%c0_53, %c0_54] : memref<1x32xf32, #tpu.memory_space<vmem>>, vector<1x32xf32>
    %cst_55 = arith.constant dense<0.000000e+00> : vector<8xf32>
    %114 = vector.multi_reduction <add>, %111, %cst_55 [1] : vector<8x32xf32> to vector<8xf32>
    %115 = vector.shape_cast %114 : vector<8xf32> to vector<8x1xf32>
    %cst_56 = arith.constant 3.200000e+01 : f32
    %116 = vector.broadcast %cst_56 : f32 to vector<8x1xf32>
    %117 = arith.divf %115, %116 : vector<8x1xf32>
    %118 = vector.broadcast %117 : vector<8x1xf32> to vector<8x32xf32>
    %119 = arith.subf %111, %118 : vector<8x32xf32>
    %120 = arith.mulf %119, %119 : vector<8x32xf32>
    %cst_57 = arith.constant dense<0.000000e+00> : vector<8xf32>
    %121 = vector.multi_reduction <add>, %120, %cst_57 [1] : vector<8x32xf32> to vector<8xf32>
    %122 = vector.shape_cast %121 : vector<8xf32> to vector<8x1xf32>
    %cst_58 = arith.constant 3.200000e+01 : f32
    %123 = vector.broadcast %cst_58 : f32 to vector<8x1xf32>
    %124 = arith.divf %122, %123 : vector<8x1xf32>
    %125 = vector.broadcast %117 : vector<8x1xf32> to vector<8x32xf32>
    %126 = arith.subf %111, %125 : vector<8x32xf32>
    %cst_59 = arith.constant 9.99999996E-13 : f32
    %127 = vector.broadcast %cst_59 : f32 to vector<8x1xf32>
    %128 = arith.addf %124, %127 : vector<8x1xf32>
    %129 = math.rsqrt %128 : vector<8x1xf32>
    %130 = vector.broadcast %129 : vector<8x1xf32> to vector<8x32xf32>
    %131 = arith.mulf %126, %130 : vector<8x32xf32>
    %132 = vector.broadcast %112 : vector<1x32xf32> to vector<8x32xf32>
    %133 = arith.mulf %131, %132 : vector<8x32xf32>
    %134 = vector.broadcast %113 : vector<1x32xf32> to vector<8x32xf32>
    %135 = arith.addf %133, %134 : vector<8x32xf32>
    %c0_60 = arith.constant 0 : index
    %c0_61 = arith.constant 0 : index
    %c0_62 = arith.constant 0 : index
    %136 = vector.load %arg13[%c0_60, %c0_61, %c0_62] : memref<1x8x32xf32, #tpu.memory_space<vmem>>, vector<1x8x32xf32>
    %137 = vector.shape_cast %136 : vector<1x8x32xf32> to vector<8x32xf32>
    %138 = vector.shape_cast %135 : vector<8x32xf32> to vector<1x8x32xf32>
    tpu.vector_store %arg13[%c0_60, %c0_61, %c0_62], %138 {strides = array<i32>} : memref<1x8x32xf32, #tpu.memory_space<vmem>>, vector<1x8x32xf32>,
    return
  }
  func.func @transform_0(%arg0: i32) -> (i32, i32, i32) {
    %c0_i32 = arith.constant 0 : i32
    %c0_i32_0 = arith.constant 0 : i32
    %c0_i32_1 = arith.constant 0 : i32
    return %arg0, %c0_i32, %c0_i32_0 : i32, i32, i32
  }
  func.func @transform_1(%arg0: i32) -> (i32, i32, i32) {
    %c0_i32 = arith.constant 0 : i32
    %c0_i32_0 = arith.constant 0 : i32
    %c0_i32_1 = arith.constant 0 : i32
    return %arg0, %c0_i32, %c0_i32_0 : i32, i32, i32
  }
  func.func @transform_2(%arg0: i32) -> (i32, i32) {
    %c0_i32 = arith.constant 0 : i32
    %c0_i32_0 = arith.constant 0 : i32
    %c0_i32_1 = arith.constant 0 : i32
    return %c0_i32, %c0_i32_0 : i32, i32
  }
  func.func @transform_3(%arg0: i32) -> (i32, i32) {
    %c0_i32 = arith.constant 0 : i32
    %c0_i32_0 = arith.constant 0 : i32
    %c0_i32_1 = arith.constant 0 : i32
    return %c0_i32, %c0_i32_0 : i32, i32
  }
  func.func @transform_4(%arg0: i32) -> (i32, i32) {
    %c0_i32 = arith.constant 0 : i32
    %c0_i32_0 = arith.constant 0 : i32
    %c0_i32_1 = arith.constant 0 : i32
    return %c0_i32, %c0_i32_0 : i32, i32
  }
  func.func @transform_5(%arg0: i32) -> (i32, i32) {
    %c0_i32 = arith.constant 0 : i32
    %c0_i32_0 = arith.constant 0 : i32
    %c0_i32_1 = arith.constant 0 : i32
    return %c0_i32, %c0_i32_0 : i32, i32
  }
  func.func @transform_6(%arg0: i32) -> (i32, i32) {
    %c0_i32 = arith.constant 0 : i32
    %c0_i32_0 = arith.constant 0 : i32
    %c0_i32_1 = arith.constant 0 : i32
    return %c0_i32, %c0_i32_0 : i32, i32
  }
  func.func @transform_7(%arg0: i32) -> (i32, i32) {
    %c0_i32 = arith.constant 0 : i32
    %c0_i32_0 = arith.constant 0 : i32
    %c0_i32_1 = arith.constant 0 : i32
    return %c0_i32, %c0_i32_0 : i32, i32
  }
  func.func @transform_8(%arg0: i32) -> (i32, i32) {
    %c0_i32 = arith.constant 0 : i32
    %c0_i32_0 = arith.constant 0 : i32
    %c0_i32_1 = arith.constant 0 : i32
    return %c0_i32, %c0_i32_0 : i32, i32
  }
  func.func @transform_9(%arg0: i32) -> (i32, i32) {
    %c0_i32 = arith.constant 0 : i32
    %c0_i32_0 = arith.constant 0 : i32
    %c0_i32_1 = arith.constant 0 : i32
    return %c0_i32, %c0_i32_0 : i32, i32
  }
  func.func @transform_10(%arg0: i32) -> (i32, i32) {
    %c0_i32 = arith.constant 0 : i32
    %c0_i32_0 = arith.constant 0 : i32
    %c0_i32_1 = arith.constant 0 : i32
    return %c0_i32, %c0_i32_0 : i32, i32
  }
  func.func @transform_11(%arg0: i32) -> (i32, i32) {
    %c0_i32 = arith.constant 0 : i32
    %c0_i32_0 = arith.constant 0 : i32
    %c0_i32_1 = arith.constant 0 : i32
    return %c0_i32, %c0_i32_0 : i32, i32
  }
  func.func @transform_12(%arg0: i32) -> (i32, i32, i32) {
    %c0_i32 = arith.constant 0 : i32
    %c0_i32_0 = arith.constant 0 : i32
    %c0_i32_1 = arith.constant 0 : i32
    return %arg0, %c0_i32, %c0_i32_0 : i32, i32, i32
  }
}

</mosaic_0001>

<bundles_post_ra>
// kernel: tpu_custom_call.1
= control target key start
LH: loop header
LB: loop body
LE: loop exit
PB: predicated region body
PF: predicated region fallthrough
CT: control target
= control target key end

     0   :  { %s2948_s0 = inlined_call_operand.hbm [shape: f32[2,8,32], index: 0, kind: input, shape index: {}]   ;;  %s2949_s1 = inlined_call_operand.hbm [shape: f32[2,1,8], index: 1, kind: input, shape index: {}]   ;;  %s2950_s2 = inlined_call_operand.hbm [shape: f32[32,32], index: 2, kind: input, shape index: {}]   ;;  %s2951_s3 = inlined_call_operand.vmem [shape: f32[1,32], index: 3, kind: input, shape index: {}]   ;;  %s2952_s4 = inlined_call_operand.hbm [shape: f32[32,32], index: 4, kind: input, shape index: {}]   ;;  %s2953_s5 = inlined_call_operand.vmem [shape: f32[1,32], index: 5, kind: input, shape index: {}]   ;;  %s2954_s6 = inlined_call_operand.hbm [shape: f32[32,32], index: 6, kind: input, shape index: {}]   ;;  %s2955_s7 = inlined_call_operand.vmem [shape: f32[1,32], index: 7, kind: input, shape index: {}]   ;;  %s2956_s8 = inlined_call_operand.hbm [shape: f32[32,32], index: 8, kind: input, shape index: {}]   ;;  %s2957_s9 = inlined_call_operand.vmem [shape: f32[1,32], index: 9, kind: input, shape index: {}]   ;;  %s2958_s10 = inlined_call_operand.vmem [shape: f32[1,32], index: 10, kind: input, shape index: {}]   ;;  %s2959_s11 = inlined_call_operand.vmem [shape: f32[1,32], index: 11, kind: input, shape index: {}]   ;;  %s2960_s12 = inlined_call_operand.hbm [shape: f32[2,8,32], index: 12, kind: output, shape index: {}]  }
   0x1   :  { %2969 = sst [smem:[#allocation24_spill]] %s2948_s0 }
   0x2   :  { %2970 = sst [smem:[#allocation25_spill]] %s2950_s2 }
   0x3   :  { %2971 = sst [smem:[#allocation26_spill]] %s2952_s4 }
   0x4   :  { %2972 = sst [smem:[#allocation27_spill]] %s2954_s6 }
   0x5   :  { %2973 = sst [smem:[#allocation28_spill]] %s2956_s8 }
   0x6   :  { %17 = vsyncpa [#allocation3], 0 }
   0x7   :  { %19 = vsyncpa [#allocation3 + $0x1], 0 }
   0x8   :  { %20 = vsyncpa [#allocation6], 0 }
   0x9   :  { %22 = vsyncpa [#allocation6 + $0x1], 0 }
   0xa   :  { %23 = vsyncpa [#allocation9], 0 }
   0xb   :  { %24 = vsyncpa [#allocation12], 0 }
   0xc   :  { %25 = vsyncpa [#allocation4], 0 }
   0xd   :  { %27 = vsyncpa [#allocation4 + $0x1], 0  ;;  %s2538_s21 = smov 0   ;;  %s2540_s22 = smov 0  }
   0xe   :  { %s2542_s23 = smov 0   ;;  %s2544_s24 = smov 0  }
   0xf LB: > { %2974 = sst [smem:[#allocation20_spill]] %s2453_s23  ;;  %s2459_s25 = smov [#allocation7]   ;;  %s2457_s24 = sphi %s2544_s24, %s3003_s24   ;;  %s2453_s23 = sphi %s2542_s23, %s3005_s23   ;;  %s2449_s22 = sphi %s2540_s22, %s3007_s22   ;;  %s2445_s21 = sphi %s2538_s21, %s3006_s21  }
  0x10   : > { %s338_s26 = sshll.u32 %s2459_s25, 4  ;;  %s2559_s27 = sadd.s32 4294967295, %s2457_s24   ;;  %s339_s26 = int_to_ptr.vmem [resolvable:$true] %s338_s26 }
  0x11   : > { %p1922_p0 = scmp.ge.s32.totalorder %s2457_s24, 1  ;;  %p2962_p1 = scmp.eq.s32.totalorder %s2559_s27, 0 }
  0x12   : > { %p326_p2 = scmp.lt.s32.totalorder %s2457_s24, 3  ;;  %s2460_s29 = smov [#allocation8]  }
  0x13   : > { %s354_s30 = sshll.u32 %s2460_s29, 4  ;;  %s2461_s14 = smov [#allocation10]   ;;  %s2577_s30 = int_to_ptr.vmem [resolvable:$true] %s354_s30 }
  0x14   : > { %p2564_p3 = pnand %p1922_p0, %p326_p2  ;;  %s370_s15 = sshll.u32 %s2461_s14, 4  ;;  %s2579_s15 = int_to_ptr.vmem [resolvable:$true] %s370_s15 }
  0x15   : > { %s2228_s16 = scalar_lea.vmem %s339_s26, 512  ;;  %p2236_p11 = scmp.lt.s32.totalorder %s339_s26, %s339_s26 }
  0x16   : > { %s2975_s28 = scalar_select %p2564_p3, 1, 0 }
  0x17   : > { %p2122_p5 = pneg %p2564_p3  ;;  %p2229_p8 = scmp.ne.s32.totalorder %s339_s26, %s2228_s16 }
  0x18   : > { %p2237_p12 = scmp.lt.s32.totalorder %s2228_s16, %s2228_s16 }
  0x19   : > { %p2573_p6 = pnand %p2122_p5, %p2962_p1 }
  0x1a   : > { %p2238_p13 = por %p2237_p12, %p2236_p11 }
  0x1b   : > { %p2219_p7 = pneg %p2573_p6 }
  0x1d   : > { %p2231_p9 = pnand %p2229_p8, %p2219_p7 }
  0x1f   : > { %p2232_p10 = pneg %p2231_p9 }
  0x21   : > { %p2239_p0 = pnand %p2238_p13, %p2232_p10 }
  0x23   : > { %2242 = shalt.err (!%p2239_p0)
}
  0x24   : > { %s2462_s17 = smov 128   ;;  %s2463_s18 = smov 8  }
  0x25   : > { %s2977_s2 = sld [smem:[#allocation25_spill]]  ;;  %s2254_s25 = scalar_lea.vmem %s2577_s30, 512 }
  0x26   : > { %p2255_p2 = scmp.ne.s32.totalorder %s2577_s30, %s2254_s25  ;;  %p2262_p9 = scmp.lt.s32.totalorder %s2577_s30, %s2577_s30 }
  0x27   : > { %p2263_p10 = scmp.lt.s32.totalorder %s2254_s25, %s2254_s25 }
  0x28   : > { %p2257_p5 = pnand %p2255_p2, %p2219_p7 }
  0x29   : > { %p2264_p11 = por %p2263_p10, %p2262_p9 }
  0x2a   : > { %p2258_p8 = pneg %p2257_p5 }
  0x2b   : > { %2125 = dma.hbm_to_vmem [thread:$0]  (!%p2573_p6), %s2977_s2, 512, %s339_s26, [#allocation6], %s2462_s17, %s2462_s17, %s2463_s18  }
  0x2c   : > { %p2265_p12 = pnand %p2264_p11, %p2258_p8 }
  0x2e   : > { %2268 = shalt.err (!%p2265_p12)
}
  0x2f   : > { %s2978_s4 = sld [smem:[#allocation26_spill]]  ;;  %s2280_s14 = scalar_lea.vmem %s2579_s15, 512 }
  0x30   : > { %p2281_p13 = scmp.ne.s32.totalorder %s2579_s15, %s2280_s14  ;;  %p2288_p5 = scmp.lt.s32.totalorder %s2579_s15, %s2579_s15 }
  0x31   : > { %p2289_p8 = scmp.lt.s32.totalorder %s2280_s14, %s2280_s14 }
  0x32   : > { %p2283_p0 = pnand %p2281_p13, %p2219_p7 }
  0x33   : > { %p2290_p9 = por %p2289_p8, %p2288_p5 }
  0x34   : > { %p2284_p2 = pneg %p2283_p0 }
  0x35   : > { %2128 = dma.hbm_to_vmem [thread:$0]  (!%p2573_p6), %s2978_s4, 512, %s2577_s30, [#allocation9], %s2462_s17, %s2462_s17, %s2463_s18  }
  0x36   : > { %p2291_p10 = pnand %p2290_p9, %p2284_p2 }
  0x38   : > { %2294 = shalt.err (!%p2291_p10)
}
  0x39   : > { %s2979_s6 = sld [smem:[#allocation27_spill]]  ;;  %s2464_s19 = smov [#allocation11]  }
  0x3a   : > { %s386_s20 = sshll.u32 %s2464_s19, 4  ;;  %s387_s20 = int_to_ptr.vmem [resolvable:$true] %s386_s20 }
  0x3b   : > { %s2306_s25 = scalar_lea.vmem %s387_s20, 512  ;;  %p2314_p0 = scmp.lt.s32.totalorder %s387_s20, %s387_s20 }
  0x3c   : > { %p2307_p11 = scmp.ne.s32.totalorder %s387_s20, %s2306_s25  ;;  %p2315_p2 = scmp.lt.s32.totalorder %s2306_s25, %s2306_s25 }
  0x3e   : > { %p2309_p12 = pnand %p2307_p11, %p2219_p7  ;;  %p2316_p5 = por %p2315_p2, %p2314_p0 }
  0x3f   : > { %2131 = dma.hbm_to_vmem [thread:$0]  (!%p2573_p6), %s2979_s6, 512, %s2579_s15, [#allocation9], %s2462_s17, %s2462_s17, %s2463_s18  }
  0x40   : > { %p2310_p13 = pneg %p2309_p12 }
  0x42   : > { %p2317_p8 = pnand %p2316_p5, %p2310_p13 }
  0x44   : > { %2320 = shalt.err (!%p2317_p8)
}
  0x45   : > { %s2980_s8 = sld [smem:[#allocation28_spill]]  ;;  %s1921_s13 = sadd.s32 4294967294, %s2457_s24  }
  0x46   : > { %s2639_s26 = sadd.s32 1, %s2457_s24   ;;  %s40_s16 = sadd.s32 1, %s2453_s23 }
  0x47   : > { %2981 = sst [smem:[#allocation21_spill]] %s2639_s26  ;;  %s37_s14 = ssub.s32 %s2457_s24, %s2639_s26 }
  0x48   : > { %p38_p7 = scmp.eq.s32.totalorder %s37_s14, 0  ;;  %p47_p9 = scmp.ne.s32.totalorder %s2453_s23, %s2449_s22 }
  0x49   : > { %p48_p10 = scmp.eq.s32.totalorder %s2457_s24, 0  ;;  %p53_p11 = scmp.ne.s32.totalorder %s2449_s22, %s2445_s21 }
  0x4a   : > { %s2650_s30 = scalar_select %p38_p7, %s2453_s23, %s40_s16  }
  0x4b   : > { %2134 = dma.hbm_to_vmem [thread:$0]  (!%p2573_p6), %s2980_s8, 512, %s387_s20, [#allocation12], %s2462_s17, %s2462_s17, %s2463_s18  }
  0x4c   : > { %2982 = sst [smem:[#allocation22_spill]] %s2650_s30  ;;  %p2652_p12 = por %p48_p10, %p47_p9 }
  0x4d   : > { %p2658_p6 = por %p2962_p1, %p53_p11  ;;  %p313_p13 = scmp.eq.s32.totalorder %s2559_s27, 1 }
  0x4e   : > { %p319_p0 = scmp.eq.s32.totalorder %s1921_s13, 1  ;;  %p2150_p2 = scmp.lt.s32.totalorder %s2457_s24, 2 }
  0x4f   : > { %s2984_s17 = scalar_select %p2658_p6, 1, 0 }
  0x50   : > { %s2665_s18 = sand.u32 1, %s2453_s23   ;;  %p2667_p5 = por %p313_p13, %p47_p9 }
  0x51   : > { %p2671_p8 = por %p319_p0, %p53_p11  ;;  %s1928_s15 = sshll.u32 %s2665_s18, 3 }
  0x52   : > { %s2985_s20 = scalar_select %p2667_p5, 1, 0 }
  0x53   : > { %s2986_s25 = scalar_select %p2671_p8, 1, 0 }
  0x54   : > { %s1929_s29 = sshll.u32 %s2457_s24, 7  ;;  %s2988_s0 = sld [smem:[#allocation24_spill]] }
  0x55   : > { %2987 = sst [smem:[#allocation23_spill]] %s2986_s25  ;;  %s413_s13 = scalar_lea.vmem [#allocation2], %s1928_s15 }
  0x56   : > { %s420_s4 = sshll.u32 %s413_s13, 4  ;;  %p2686_p7 = pnand %p2150_p2, %p2652_p12  ;;  %s2682_s4 = int_to_ptr.vmem [resolvable:$true] %s420_s4 }
  0x57   : > { %s410_s30 = scalar_lea.sflag [#allocation3], %s2665_s18 }
  0x58   : > { %p2323_p10 = pneg %p2686_p7 }
  0x5a   : > { %s2680_s2 = scalar_lea.hbm %s2988_s0, %s1929_s29  ;;  %s2326_s19 = scalar_lea.hbm %s2988_s0, 256 }
  0x5b   : > { %s2321_s23 = scalar_lea.hbm %s2680_s2, 128  ;;  %p2327_p12 = scmp.lt.s32.totalorder %s2680_s2, %s2988_s0 }
  0x5c   : > { %p2322_p9 = scmp.ne.s32.totalorder %s2680_s2, %s2321_s23  ;;  %p2328_p0 = scmp.lt.s32.totalorder %s2326_s19, %s2321_s23 }
  0x5e   : > { %p2324_p11 = pnand %p2323_p10, %p2322_p9  ;;  %p2329_p2 = por %p2328_p0, %p2327_p12 }
  0x60   : > { %p2325_p13 = pneg %p2324_p11 }
  0x62   : > { %p2330_p4 = pnand %p2329_p2, %p2325_p13 }
  0x64   : > { %2333 = shalt.err (!%p2330_p4)
}
  0x65   : > { %s2334_s13 = scalar_lea.vmem %s2682_s4, 128  ;;  %s2465_s15 = smov [#allocation2]  }
  0x66   : > { %p2335_p1 = scmp.ne.s32.totalorder %s2682_s4, %s2334_s13  ;;  %s2339_s29 = sshll.u32 %s2465_s15, 4  ;;  %s2340_s29 = int_to_ptr.vmem [resolvable:$false] %s2339_s29 }
  0x67   : > { %s2341_s8 = scalar_lea.vmem %s2340_s29, 256  ;;  %p2342_p8 = scmp.lt.s32.totalorder %s2682_s4, %s2340_s29 }
  0x68   : > { %p2337_p9 = pnand %p2335_p1, %p2323_p10  ;;  %p2343_p5 = scmp.lt.s32.totalorder %s2341_s8, %s2334_s13 }
  0x6a   : > { %p2338_p11 = pneg %p2337_p9  ;;  %p2344_p6 = por %p2343_p5, %p2342_p8 }
  0x6c   : > { %p2345_p12 = pnand %p2344_p6, %p2338_p11 }
  0x6e   : > { %2348 = shalt.err (!%p2345_p12)
}
  0x6f   : > { %2138 = dma.hbm_to_vmem [thread:$0]  (!%p2686_p7), %s2680_s2, 128, %s2682_s4, %s410_s30  }
  0x70   : > { %s1930_s23 = sshll.u32 %s2457_s24, 4  ;;  %s430_s19 = scalar_lea.vmem [#allocation5], %s2665_s18 }
  0x71   : > { %s437_s14 = sshll.u32 %s430_s19, 4  ;;  %s435_s29 = scalar_lea.hbm %s2949_s1, %s1930_s23  ;;  %s438_s14 = int_to_ptr.vmem [resolvable:$true] %s437_s14 }
  0x72   : > { %s2990_s8 = sand.u32 1, %s2457_s24   ;;  %s2349_s0 = scalar_lea.hbm %s435_s29, 16 }
  0x73   : > { %s428_s13 = scalar_lea.sflag [#allocation6], %s2990_s8  ;;  %p2350_p1 = scmp.ne.s32.totalorder %s435_s29, %s2349_s0 }
  0x74   : > { %s2354_s2 = scalar_lea.hbm %s2949_s1, 32  ;;  %p2355_p5 = scmp.lt.s32.totalorder %s435_s29, %s2949_s1 }
  0x75   : > { %p2352_p4 = pnand %p2350_p1, %p2323_p10  ;;  %p2356_p8 = scmp.lt.s32.totalorder %s2354_s2, %s2349_s0 }
  0x77   : > { %p2353_p6 = pneg %p2352_p4  ;;  %p2357_p13 = por %p2356_p8, %p2355_p5 }
  0x79   : > { %p2358_p0 = pnand %p2357_p13, %p2353_p6 }
  0x7b   : > { %2361 = shalt.err (!%p2358_p0)
}
  0x7c   : > { %s2362_s18 = scalar_lea.vmem %s438_s14, 16  ;;  %s2466_s23 = smov [#allocation5]  }
  0x7d   : > { %p2363_p2 = scmp.ne.s32.totalorder %s438_s14, %s2362_s18  ;;  %s2367_s19 = sshll.u32 %s2466_s23, 4  ;;  %s2368_s19 = int_to_ptr.vmem [resolvable:$false] %s2367_s19 }
  0x7e   : > { %s2369_s26 = scalar_lea.vmem %s2368_s19, 32  ;;  %p2370_p12 = scmp.lt.s32.totalorder %s438_s14, %s2368_s19 }
  0x7f   : > { %p2365_p9 = pnand %p2363_p2, %p2323_p10  ;;  %p2371_p1 = scmp.lt.s32.totalorder %s2369_s26, %s2362_s18 }
  0x81   : > { %p2366_p11 = pneg %p2365_p9  ;;  %p2372_p4 = por %p2371_p1, %p2370_p12 }
  0x83   : > { %p2373_p3 = pnand %p2372_p4, %p2366_p11 }
  0x85   : > { %2376 = shalt.err (!%p2373_p3)
}
  0x86   : > { %2141 = dma.hbm_to_vmem [thread:$0]  (!%p2686_p7), %s435_s29, 16, %s438_s14, %s428_s13  }
  0x87   : > { %p2991_p6 = scmp.ne.s32.totalorder %s2975_s28, 0 }
  0x88   : > { %s2740_s0 = sand.u32 (!%p2991_p6), 1, %s2449_s22   ;;  %p2992_p10 = scmp.ne.s32.totalorder (!%p2991_p6), %s2984_s17, 0 }
  0x89   : > { %446 = sbr.rel (%p2991_p6) target bundleno = 2459 (0x99b), region = 68  ;;  %s1932_s25 = sshll.u32 (!%p2991_p6), %s2740_s0, 3 }
  0x8a   : > { %s449_s16 = scalar_lea.sflag (!%p2991_p6), [#allocation3], %s2740_s0  ;;  %s2746_s15 = scalar_lea.vmem (!%p2991_p6), [#allocation2], %s1932_s25 }
  0x8e   : > { %2420 = dma.done.wait (%p2992_p10), %s449_s16, 128  }
  0x8f   : > { %2422 = vsyncadd (%p2992_p10), %s449_s16, 4294967168  ;;  %s457_s6 = sand.u32 1, %s2559_s27   ;;  %s460_s14 = scalar_lea.vmem [#allocation5], %s2740_s0 }
  0x90   : > { %s458_s28 = scalar_lea.sflag [#allocation6], %s457_s6 }
  0x91   : > { %2424 = dma.done.wait (%p2992_p10), %s458_s28, 16  }
  0x92   : > { %2426 = vsyncadd (%p2992_p10), %s458_s28, 4294967280  ;;  %p2993_p3 = scmp.eq.s32.totalorder %s2559_s27, 0 }
  0x94   : > { %2428 = dma.done.wait (%p2993_p3), [#allocation6], 512   ;;  %p2994_p7 = pmov %p2993_p3 }
  0x95   : > { %p2995_p5 = pmov %p2993_p3 }
  0x96   : > { %2430 = vsyncadd (%p2994_p7), [#allocation6], 4294966784 }
  0x97   : > { %2432 = dma.done.wait (%p2995_p5), [#allocation9], 1024   ;;  %p2996_p8 = pmov %p2993_p3 }
  0x98   : > { %p2997_p13 = pmov %p2993_p3 }
  0x99   : > { %2434 = vsyncadd (%p2996_p8), [#allocation9], 4294966272 }
  0x9a   : > { %2436 = dma.done.wait (%p2997_p13), [#allocation12], 512   ;;  %p2998_p0 = pmov %p2993_p3 }
  0x9b   : > { %v2467_v0 = vmov 0.0   ;;  %vm2468_vm0 = vmmov 0   ;;  %v525_v1 = vld [vmem:[#allocation7 + $0x18] sm:$0xff]  ;;  %v524_v3 = vld [vmem:[#allocation7 + $0x10] sm:$0xff]  ;;  %v523_v5 = vld [vmem:[#allocation7 + $0x8] sm:$0xff]  ;;  %vm533_vm1 = vcmask 261120  }
  0x9c   : > { %2438 = vsyncadd (%p2998_p0), [#allocation12], 4294966784  ;;  %2007 = vmatprep.subr.mxu0 %v2467_v0  ;;  %2018 = vmatprep.subr.mxu1 %v2467_v0  ;;  %v610_v2 = vld [vmem:[#allocation8 + $0x18] sm:$0xff]  ;;  %v609_v4 = vld [vmem:[#allocation8 + $0x10] sm:$0xff]  ;;  %vm770_vm2 = vcmask 64512   ;;  %s2469_s2 = smov 120  }
  0x9d   : > { %2026 = vmatprep.mubr.msk.f32.mxu1 %vm2468_vm0, %v2467_v0  ;;  %2015 = vmatprep.mubr.msk.f32.mxu0 %vm2468_vm0, %v2467_v0  ;;  %v608_v6 = vld [vmem:[#allocation8 + $0x8] sm:$0xff]  ;;  %v522_v7 = vld [vmem:[#allocation7] sm:$0xff]  ;;  %v691_v10 = vld [vmem:[#allocation10 + $0x18] sm:$0xff]  ;;  %s2470_s18 = smov 112   ;;  %s2471_s23 = smov 104  }
  0x9e   : > { %2008 = vmatpush3.msra.mxu0 %v525_v1  ;;  %2019 = vmatpush3.msra.mxu1 %v610_v2  ;;  %v607_v8 = vld [vmem:[#allocation8] sm:$0xff]  ;;  %v2781_v9 = vld [vmem:[%s2746_s15] sm:$0xff]  ;;  %s520_s17 = scalar_lea.vmem [#allocation13], %s1932_s25  ;;  %s1780_s4 = scalar_lea.sflag [#allocation4], %s2740_s0 }
  0x9f   : > { %2009 = vmatprep.subr.mxu0 %v2467_v0  ;;  %2020 = vmatprep.subr.mxu1 %v2467_v0  ;;  %v690_v11 = vld [vmem:[#allocation10 + $0x10] sm:$0xff]  ;;  %v689_v12 = vld [vmem:[#allocation10 + $0x8] sm:$0xff]  ;;  %v688_v13 = vld [vmem:[#allocation10] sm:$0xff]  ;;  %s1793_s29 = sshll.u32 %s520_s17, 4  ;;  %p2999_p9 = scmp.ne.s32.totalorder %s2985_s20, 0  ;;  %s1794_s29 = int_to_ptr.vmem [resolvable:$true] %s1793_s29 }
  0xa0   : > { %2010 = vmatpush3.msra.mxu0 %v524_v3  ;;  %2021 = vmatpush3.msra.mxu1 %v609_v4  ;;  %v1940_v14 = vld [vmem:[%s2953_s5] ss:$0 sm:$0xff]  ;;  %v939_v48 = vld [vmem:[#allocation11] sm:$0xff]  ;;  %s2377_s30 = scalar_lea.vmem %s1794_s29, 128 }
  0xa1   : > { %2011 = vmatprep.subr.mxu0 %v2467_v0  ;;  %2022 = vmatprep.subr.mxu1 %v2467_v0  ;;  %v1938_v15 = vld [vmem:[%s2951_s3] ss:$0 sm:$0xff]  ;;  %p2378_p2 = scmp.ne.s32.totalorder %s1794_s29, %s2377_s30 }
  0xa2   : > { %2012 = vmatpush3.msra.mxu0 %v523_v5  ;;  %2023 = vmatpush3.msra.mxu1 %v608_v6  ;;  %v1942_v22 = vld [vmem:[%s2955_s7] ss:$0 sm:$0xff] }
  0xa3   : > { %2013 = vmatprep.subr.mxu0 %v2467_v0  ;;  %2024 = vmatprep.subr.mxu1 %v2467_v0  ;;  %v2839_v29 = vld [vmem:[%s460_s14] ss:$0 sm:$0xff]  ;;  %s1965_s14 = sshll.u32 %s2559_s27, 7  ;;  %p2379_p11 = pnand %p2378_p2, %p2999_p9 }
  0xa4   : > { %2014 = vmatpush3.msra.mxu0 %v522_v7  ;;  %2025 = vmatpush3.msra.mxu1 %v607_v8  ;;  %v1108_v51 = vld [vmem:[#allocation11 + $0x8] sm:$0xff] }
  0xa5   : > { %2027 = vmatmul.mubr.msk.f32.vlgmr.msra.gmra.mxu1 %vm533_vm1, %v2781_v9  ;;  %2029 = vmatprep.subr.mxu0 %v2467_v0  ;;  %p2380_p12 = pneg %p2379_p11 }
  0xa6   : > { %2016 = vmatmul.mubr.msk.f32.vlgmr.msra.gmra.mxu0 %vm533_vm1, %v2781_v9  ;;  %2040 = vmatprep.subr.mxu1 %v2467_v0 }
  0xa7   : > { %2030 = vmatpush3.msra.mxu0 %v691_v10  ;;  %2037 = vmatprep.mubr.msk.f32.mxu0 %vm2468_vm0, %v2467_v0 }
  0xa8   : > { %2031 = vmatprep.subr.mxu0 %v2467_v0  ;;  %2042 = vmatprep.mubr.msk.f32.mxu1 %vm2468_vm0, %v2467_v0 }
  0xa9   : > { %2032 = vmatpush3.msra.mxu0 %v690_v11 }
  0xaa   : > { %2033 = vmatprep.subr.mxu0 %v2467_v0 }
  0xab   : > { %2034 = vmatpush3.msra.mxu0 %v689_v12 }
  0xac   : > { %2035 = vmatprep.subr.mxu0 %v2467_v0 }
  0xad   : > { %2036 = vmatpush3.msra.mxu0 %v688_v13 }
  0xae   : > { %2038 = vmatmul.mubr.msk.f32.vlgmr.msra.gmra.mxu0 %vm533_vm1, %v2781_v9  ;;  %2050 = vmatprep.subr.mxu0 %v2467_v0 }
  0xaf   : > { %2052 = vmatprep.mubr.msk.f32.mxu0 %vm2468_vm0, %v2467_v0 }
 0x165   : > { %v684_v16 = vpop.f32.mrf.mxu1 }
 0x166   : > { %v2809_v17 = vadd.f32 %v1940_v14, %v684_v16  ;;  %v603_v18 = vpop.f32.mrf.mxu0 }
 0x167   : > { %v2811_v19 = vadd.f32 %v1938_v15, %v603_v18  ;;  %v2028_v20 = vpop.f32.mrf.mxu1 }
 0x168   : > { %942 = vrot.lane.b32.xlu0 %v2809_v17, %s2469_s2  ;;  %2041 = vmatpush3.xpose.msk.msra.mxu1 %vm770_vm2, %v2809_v17  ;;  %v2017_v21 = vpop.f32.mrf.mxu0 }
 0x169   : > { %2045 = vmatprep.subr.mxu1 %v2467_v0 }
 0x16b   : > { %2043 = vmatmul.mubr.msk.f32.vlgmr.msra.gmra.mxu1 %vm770_vm2, %v2811_v19 }
 0x16c   : > { %940 = vrot.lane.b32.xlu0 %v2811_v19, %s2469_s2  ;;  %2047 = vmatprep.mubr.msk.f32.mxu1 %vm2468_vm0, %v2467_v0 }
 0x16e   : > { %v765_v23 = vpop.f32.mrf.mxu0 }
 0x16f   : > { %v2825_v24 = vadd.f32 %v1942_v22, %v765_v23 }
 0x170   : > { %v2039_v25 = vpop.f32.mrf.mxu0 }
 0x171   : > { %1030 = vrot.lane.b32.xlu0 %v2825_v24, %s2469_s2  ;;  %2046 = vmatpush3.msra.mxu1 %v2825_v24  ;;  %s1791_s2 = scalar_lea.hbm %s2960_s12, %s1965_s14 }
 0x172   : > { %2055 = vmatprep.subr.mxu1 %v2467_v0 }
 0x175   : > { %1257 = vrot.lane.b32.xlu0 %v2809_v17, %s2470_s18 }
 0x1da   : > { %v943_v26 = vpop.permute.xlu0 %942 }
 0x1db   : > { %2051 = vmatpush3.xpose.msk.msra.mxu0 %vm770_vm2, %v943_v26 }
 0x1dc   : > { %2060 = vmatprep.subr.mxu0 %v2467_v0 }
 0x1de   : > { %v941_v27 = vpop.permute.xlu0 %940 }
 0x1df   : > { %2053 = vmatmul.mubr.msk.f32.vlgmr.msra.gmra.mxu0 %vm770_vm2, %v941_v27 }
 0x1e0   : > { %2062 = vmatprep.mubr.msk.f32.mxu0 %vm2468_vm0, %v2467_v0  ;;  %2061 = vmatpush3.msra.mxu0 %v1108_v51 }
 0x1e1   : > { %2070 = vmatprep.subr.mxu0 %v2467_v0 }
 0x1e3   : > { %v1031_v43 = vpop.permute.xlu0 %1030 }
 0x1e7   : > { %v1258_v52 = vpop.permute.xlu0 %1257 }
 0x22b   : > { %v843_v28 = vpop.f32.mrf.mxu1 }
 0x22c   : > { %v847_v30 = vmul.f32 0.35355338, %v843_v28 }
 0x22d   : > { %v2044_v31 = vpop.f32.mrf.mxu1 }
 0x22e   : > { %v854_v32 = vadd.f32 %v2839_v29, %v847_v30 }
 0x230   : > { %v855_v33 = vsel %vm770_vm2, %v854_v32, -inf }
 0x231   : > { %856 = vmax.xlane.f32.xlu1 %v855_v33 }
 0x29f   : > { %v1014_v34 = vpop.f32.mrf.mxu0 }
 0x2a0   : > { %v1018_v35 = vmul.f32 0.35355338, %v1014_v34 }
 0x2a1   : > { %v2054_v36 = vpop.f32.mrf.mxu0 }
 0x2a2   : > { %v1019_v37 = vadd.f32 %v2839_v29, %v1018_v35 }
 0x2a4   : > { %v1020_v38 = vsel %vm770_vm2, %v1019_v37, -inf }
 0x2a5   : > { %1021 = vmax.xlane.f32.xlu1 %v1020_v38 }
 0x2ba   : > { %v857_v39 = vpop.xlane.xlu1 %856 }
 0x2bb   : > { %v858_v40 = vsub.f32 %v854_v32, %v857_v39 }
 0x2bd   : > { %v859_v41 = vmul.f32 1.442695, %v858_v40 }
 0x2bf   : > { %2199 = vpow2.f32 %v859_v41 }
 0x2cc   : > { %v2200_v42 = vpop.eup %2199 }
 0x2cd   : > { %2048 = vmatmul.mubr.msk.f32.vlgmr.msra.gmra.mxu1 %vm770_vm2, %v2200_v42  ;;  %v861_v44 = vsel %vm770_vm2, %v2200_v42, 0.0 }
 0x2ce   : > { %862 = vadd.xlane.f32.xlu0 %v861_v44  ;;  %2056 = vmatpush3.msra.mxu1 %v1031_v43 }
 0x2cf   : > { %2057 = vmatprep.mubr.msk.f32.mxu1 %vm2468_vm0, %v2467_v0  ;;  %2065 = vmatprep.subr.mxu1 %v2467_v0 }
 0x2e4   : > { %1344 = vrot.lane.b32.xlu0 %v2825_v24, %s2470_s18 }
 0x2e8   : > { %1497 = vrot.lane.b32.xlu0 %v2811_v19, %s2471_s23 }
 0x32e   : > { %v1022_v45 = vpop.xlane.xlu1 %1021 }
 0x32f   : > { %v1023_v46 = vsub.f32 %v1019_v37, %v1022_v45  ;;  %v1664_v37 = vld [vmem:[#allocation11 + $0x18] sm:$0xff] }
 0x331   : > { %v1024_v47 = vmul.f32 1.442695, %v1023_v46  ;;  %v1961_v46 = vld [vmem:[%s2957_s9] ss:$0 sm:$0xff] }
 0x333   : > { %2201 = vpow2.f32 %v1024_v47 }
 0x340   : > { %v2202_v49 = vpop.eup %2201 }
 0x341   : > { %2058 = vmatmul.mubr.msk.f32.vlgmr.msra.gmra.mxu1 %vm770_vm2, %v2202_v49  ;;  %v1026_v50 = vsel %vm770_vm2, %v2202_v49, 0.0 }
 0x342   : > { %1027 = vadd.xlane.f32.xlu1 %v1026_v50  ;;  %2066 = vmatpush3.msra.mxu1 %v939_v48 }
 0x343   : > { %2067 = vmatprep.mubr.msk.f32.mxu1 %vm2468_vm0, %v2467_v0  ;;  %2075 = vmatprep.subr.mxu1 %v2467_v0 }
 0x353   : > { %1255 = vrot.lane.b32.xlu1 %v2811_v19, %s2470_s18  ;;  %s2472_s18 = smov [#allocation13]  }
 0x354   : > { %s2381_s27 = sshll.u32 %s2472_s18, 4  ;;  %s2382_s27 = int_to_ptr.vmem [resolvable:$false] %s2381_s27 }
 0x355   : > { %s2383_s25 = scalar_lea.vmem %s2382_s27, 256  ;;  %p2384_p1 = scmp.lt.s32.totalorder %s1794_s29, %s2382_s27 }
 0x356   : > { %p2385_p4 = scmp.lt.s32.totalorder %s2383_s25, %s2377_s30 }
 0x357   : > { %v863_v53 = vpop.xlane.xlu0 %862 }
 0x358   : > { %2203 = vrcp.f32 %v863_v53  ;;  %p2386_p6 = por %p2385_p4, %p2384_p1 }
 0x35a   : > { %p2387_p10 = pnand %p2386_p6, %p2380_p12 }
 0x35b   : > { %v1345_v58 = vpop.permute.xlu0 %1344 }
 0x35f   : > { %v1498_v19 = vpop.permute.xlu0 %1497 }
 0x365   : > { %v2204_v54 = vpop.eup %2203 }
 0x38d   : > { %v933_v55 = vpop.f32.mrf.mxu1 }
 0x38e   : > { %v938_v56 = vmul.f32 %v2204_v54, %v933_v55 }
 0x38f   : > { %v2049_v57 = vpop.f32.mrf.mxu1 }
 0x390   : > { %2068 = vmatmul.mubr.msk.f32.vlgmr.msra.gmra.mxu1 %vm770_vm2, %v938_v56 }
 0x391   : > { %2076 = vmatpush3.msra.mxu1 %v1345_v58  ;;  %2077 = vmatprep.mubr.msk.f32.mxu1 %vm2468_vm0, %v2467_v0 }
 0x392   : > { %2085 = vmatprep.subr.mxu1 %v2467_v0 }
 0x3cb   : > { %v1028_v59 = vpop.xlane.xlu1 %1027 }
 0x3cc   : > { %2205 = vrcp.f32 %v1028_v59 }
 0x3cf   : > { %v1256_v1 = vpop.permute.xlu1 %1255 }
 0x3d9   : > { %v2206_v60 = vpop.eup %2205 }
 0x401   : > { %v1102_v61 = vpop.f32.mrf.mxu1 }
 0x402   : > { %v1107_v62 = vmul.f32 %v2206_v60, %v1102_v61 }
 0x403   : > { %v2059_v63 = vpop.f32.mrf.mxu1 }
 0x404   : > { %2063 = vmatmul.mubr.msk.f32.vlgmr.msra.gmra.mxu0 %vm770_vm2, %v1107_v62  ;;  %v1963_v62 = vld [vmem:[%s2959_s11] ss:$0 sm:$0xff] }
 0x405   : > { %2071 = vmatpush3.xpose.msk.msra.mxu0 %vm770_vm2, %v1258_v52  ;;  %2072 = vmatprep.mubr.msk.f32.mxu0 %vm2468_vm0, %v2467_v0 }
 0x406   : > { %2080 = vmatprep.subr.mxu0 %v2467_v0 }
 0x408   : > { %2073 = vmatmul.mubr.msk.f32.vlgmr.msra.gmra.mxu0 %vm770_vm2, %v1256_v1 }
 0x409   : > { %2082 = vmatprep.mubr.msk.f32.mxu0 %vm2468_vm0, %v2467_v0 }
 0x450   : > { %v1251_v2 = vpop.f32.mrf.mxu1 }
 0x452   : > { %v2069_v3 = vpop.f32.mrf.mxu1 }
 0x4c4   : > { %v1178_v4 = vpop.f32.mrf.mxu0 }
 0x4c6   : > { %v2064_v5 = vpop.f32.mrf.mxu0 }
 0x4c8   : > { %v1329_v6 = vpop.f32.mrf.mxu0 }
 0x4c9   : > { %v1333_v7 = vmul.f32 0.35355338, %v1329_v6 }
 0x4ca   : > { %v2074_v8 = vpop.f32.mrf.mxu0 }
 0x4cb   : > { %v1334_v10 = vadd.f32 %v2839_v29, %v1333_v7 }
 0x4cd   : > { %v1335_v11 = vsel %vm770_vm2, %v1334_v10, -inf }
 0x4ce   : > { %1336 = vmax.xlane.f32.xlu1 %v1335_v11 }
 0x4df   : > { %1499 = vrot.lane.b32.xlu1 %v2809_v17, %s2471_s23  ;;  %v1422_v17 = vld [vmem:[#allocation11 + $0x10] sm:$0xff] }
 0x4e0   : > { %2081 = vmatpush3.msra.mxu0 %v1422_v17 }
 0x4e1   : > { %2090 = vmatprep.subr.mxu0 %v2467_v0 }
 0x557   : > { %v1337_v12 = vpop.xlane.xlu1 %1336 }
 0x558   : > { %v1338_v13 = vsub.f32 %v1334_v10, %v1337_v12 }
 0x55a   : > { %v1339_v14 = vmul.f32 1.442695, %v1338_v13 }
 0x55b   : > { %v1500_v16 = vpop.permute.xlu1 %1499 }
 0x55c   : > { %2207 = vpow2.f32 %v1339_v14 }
 0x569   : > { %v2208_v15 = vpop.eup %2207 }
 0x56a   : > { %2078 = vmatmul.mubr.msk.f32.vlgmr.msra.gmra.mxu1 %vm770_vm2, %v2208_v15  ;;  %v1341_v18 = vsel %vm770_vm2, %v2208_v15, 0.0 }
 0x56b   : > { %2086 = vmatpush3.xpose.msk.msra.mxu1 %vm770_vm2, %v1500_v16  ;;  %1342 = vadd.xlane.f32.xlu0 %v1341_v18 }
 0x56c   : > { %2087 = vmatprep.mubr.msk.f32.mxu1 %vm2468_vm0, %v2467_v0  ;;  %2095 = vmatprep.subr.mxu1 %v2467_v0 }
 0x56e   : > { %2088 = vmatmul.mubr.msk.f32.vlgmr.msra.gmra.mxu1 %vm770_vm2, %v1498_v19 }
 0x56f   : > { %2097 = vmatprep.mubr.msk.f32.mxu1 %vm2468_vm0, %v2467_v0  ;;  %2096 = vmatpush3.msra.mxu1 %v1664_v37 }
 0x581   : > { %1586 = vrot.lane.b32.xlu0 %v2825_v24, %s2471_s23 }
 0x5f4   : > { %v1343_v20 = vpop.xlane.xlu0 %1342 }
 0x5f5   : > { %2209 = vrcp.f32 %v1343_v20 }
 0x5f8   : > { %v1587_v26 = vpop.permute.xlu0 %1586 }
 0x602   : > { %v2210_v21 = vpop.eup %2209 }
 0x62a   : > { %v1416_v22 = vpop.f32.mrf.mxu1 }
 0x62b   : > { %v1421_v23 = vmul.f32 %v2210_v21, %v1416_v22 }
 0x62c   : > { %v2079_v25 = vpop.f32.mrf.mxu1 }
 0x62d   : > { %2083 = vmatmul.mubr.msk.f32.vlgmr.msra.gmra.mxu0 %vm770_vm2, %v1421_v23 }
 0x62e   : > { %2091 = vmatpush3.msra.mxu0 %v1587_v26  ;;  %v1571_v27 = vpop.f32.mrf.mxu1  ;;  %2092 = vmatprep.mubr.msk.f32.mxu0 %vm2468_vm0, %v2467_v0  ;;  %v1252_v0 = vadd.f32 %v1251_v2, %v1178_v4 }
 0x62f   : > { %v1575_v28 = vmul.f32 0.35355338, %v1571_v27 }
 0x630   : > { %v2089_v24 = vpop.f32.mrf.mxu1 }
 0x631   : > { %v1576_v30 = vadd.f32 %v2839_v29, %v1575_v28 }
 0x633   : > { %v1577_v31 = vsel %vm770_vm2, %v1576_v30, -inf }
 0x634   : > { %1578 = vmax.xlane.f32.xlu1 %v1577_v31 }
 0x6bd   : > { %v1579_v32 = vpop.xlane.xlu1 %1578 }
 0x6be   : > { %v1580_v33 = vsub.f32 %v1576_v30, %v1579_v32 }
 0x6c0   : > { %v1581_v34 = vmul.f32 1.442695, %v1580_v33 }
 0x6c2   : > { %2211 = vpow2.f32 %v1581_v34 }
 0x6cf   : > { %v2212_v35 = vpop.eup %2211 }
 0x6d0   : > { %2093 = vmatmul.mubr.msk.f32.vlgmr.msra.gmra.mxu0 %vm770_vm2, %v2212_v35  ;;  %v1583_v36 = vsel %vm770_vm2, %v2212_v35, 0.0 }
 0x6d1   : > { %1584 = vadd.xlane.f32.xlu1 %v1583_v36 }
 0x6ed   : > { %v1492_v38 = vpop.f32.mrf.mxu0 }
 0x6ee   : > { %v1496_v39 = vadd.f32 %v1492_v38, %v1252_v0 }
 0x6ef   : > { %v2084_v40 = vpop.f32.mrf.mxu0 }
 0x75a   : > { %v1585_v29 = vpop.xlane.xlu1 %1584 }
 0x75b   : > { %2213 = vrcp.f32 %v1585_v29 }
 0x768   : > { %v2214_v41 = vpop.eup %2213 }
 0x790   : > { %v1658_v42 = vpop.f32.mrf.mxu0 }
 0x791   : > { %v1663_v43 = vmul.f32 %v2214_v41, %v1658_v42 }
 0x792   : > { %v2094_v44 = vpop.f32.mrf.mxu0 }
 0x793   : > { %2098 = vmatmul.mubr.msk.f32.vlgmr.msra.gmra.mxu1 %vm770_vm2, %v1663_v43 }
 0x853   : > { %v1734_v45 = vpop.f32.mrf.mxu1 }
 0x854   : > { %v1738_v47 = vadd.f32 %v1734_v45, %v1496_v39 }
 0x855   : > { %v2099_v48 = vpop.f32.mrf.mxu1 }
 0x856   : > { %v1746_v49 = vadd.f32 %v1961_v46, %v1738_v47 }
 0x858   : > { %v1747_v50 = vadd.f32 %v1746_v49, %v2781_v9  ;;  %v1962_v9 = vld [vmem:[%s2958_s10] ss:$0 sm:$0xff] }
 0x85a   : > { %v1750_v51 = vsel %vm533_vm1, %v1747_v50, 0.0 }
 0x85b   : > { %1751 = vadd.xlane.f32.xlu1 %v1750_v51 }
 0x8e4   : > { %v1752_v52 = vpop.xlane.xlu1 %1751 }
 0x8e5   : > { %v1754_v53 = vmul.f32 0.03125, %v1752_v52 }
 0x8e7   : > { %v1755_v54 = vsub.f32 %v1747_v50, %v1754_v53 }
 0x8e9   : > { %v1756_v55 = vmul.f32 %v1755_v54, %v1755_v54 }
 0x8eb   : > { %v1757_v56 = vsel %vm533_vm1, %v1756_v55, 0.0 }
 0x8ec   : > { %1758 = vadd.xlane.f32.xlu0 %v1757_v56 }
 0x975   : > { %v1759_v57 = vpop.xlane.xlu0 %1758 }
 0x976   : > { %v1760_v58 = vmul.f32 0.03125, %v1759_v57 }
 0x978   : > { %v1761_v59 = vadd.f32 1e-12, %v1760_v58 }
 0x97a   : > { %2215 = vrsqrt.f32 %v1761_v59 }
 0x987   : > { %v2216_v60 = vpop.eup %2215 }
 0x988   : > { %v1763_v61 = vmul.f32 %v2216_v60, %v1755_v54 }
 0x98a   : > { %v1770_v63 = vmul.f32 %v1962_v9, %v1763_v61 }
 0x98c   : > { %v1777_v1 = vadd.f32 %v1963_v62, %v1770_v63 }
 0x98e   : > { %1778 = vst.msk [vmem:[%s520_s17] sm:$0xff] %vm533_vm1, %v1777_v1 }
 0x98f   : > { %2390 = shalt.err (!%p2387_p10)
}
 0x990   : > { %s2391_s23 = scalar_lea.hbm %s1791_s2, 128  ;;  %s2395_s26 = scalar_lea.hbm %s2960_s12, 256 }
 0x991   : > { %p2392_p3 = scmp.ne.s32.totalorder %s1791_s2, %s2391_s23  ;;  %p2396_p8 = scmp.lt.s32.totalorder %s1791_s2, %s2960_s12 }
 0x992   : > { %p2397_p13 = scmp.lt.s32.totalorder %s2395_s26, %s2391_s23 }
 0x993   : > { %p2393_p7 = pnand %p2392_p3, %p2999_p9 }
 0x994   : > { %p2398_p0 = por %p2397_p13, %p2396_p8 }
 0x995   : > { %p2394_p5 = pneg %p2393_p7 }
 0x997   : > { %p2399_p2 = pnand %p2398_p0, %p2394_p5 }
 0x999   : > { %2402 = shalt.err (!%p2399_p2)
}
 0x99a   : > { %2120 = dma.vmem_to_hbm [thread:$0]  (%p2999_p9), %s1794_s29, 128, %s1791_s2, %s1780_s4  }
 0x99b PF: > { %s3000_s6 = sld [smem:[#allocation23_spill]]  ;;  %s1805_s28 = sand.u32 1, %s2445_s21  }
 0x99c   : > { %p3002_p12 = scmp.ge.s32.totalorder %s2457_s24, 2  ;;  %s1806_s14 = scalar_lea.sflag [#allocation4], %s1805_s28 }
 0x9a1   : > { %p3001_p11 = scmp.ne.s32.totalorder %s3000_s6, 0 }
 0x9a3   : > { %p2143_p1 = pnand %p3002_p12, %p3001_p11 }
 0x9a5   : > { %p2144_p4 = pneg %p2143_p1 }
 0x9a7   : > { %2440 = dma.done.wait (%p2144_p4), %s1806_s14, 128  }
 0x9a8   : > { %2442 = vsyncadd (%p2144_p4), %s1806_s14, 4294967168  ;;  %s3003_s24 = sld [smem:[#allocation21_spill]]  ;;  %s3006_s21 = smov %s2449_s22 }
 0x9a9   : > { %s3004_s17 = sld [smem:[#allocation20_spill]] }
 0x9aa   : > { %s3005_s23 = sld [smem:[#allocation22_spill]] }
 0x9ae   : > { %p30_p6 = scmp.ge.s32.totalorder %s3003_s24, 4  }
 0x9af   : > { %s3007_s22 = smov %s3004_s17 }
 0x9b0   :  { %32 = sbr.rel (!%p30_p6) target bundleno = 15 (0xf), region = 142 }
 0x9b5   :  { %1811 = vsyncpa [#allocation3], 1 }
 0x9b6   :  { %1813 = vsyncpa [#allocation3 + $0x1], 1 }
 0x9b7   :  { %1814 = vsyncpa [#allocation6], 1 }
 0x9b8   :  { %1816 = vsyncpa [#allocation6 + $0x1], 1 }
 0x9b9   :  { %1817 = vsyncpa [#allocation9], 1 }
 0x9ba   :  { %1818 = vsyncpa [#allocation12], 1 }
 0x9bb   :  { %1819 = vsyncpa [#allocation4], 1 }
 0x9bc   :  { %1821 = vsyncpa [#allocation4 + $0x1], 1 }

</bundles_post_ra>
